<compile_context>
chip_gen: v7x
topology: tpu7x:2x2x1
jax: 0.10.0
libtpu: 0.0.40
codegen_flags: <defaults>
</compile_context>

<pallas_src>
import functools
from typing import NamedTuple

import jax
import jax.numpy as jnp
from jax.experimental import pallas as pl
from jax.experimental.pallas import tpu as pltpu

_LANE = 128


# --------------------------------------------------------------------------
# Helpers
# --------------------------------------------------------------------------


def _round_up(n, m):
    return ((n + m - 1) // m) * m


def _pick_chunk(total, target):
    """Largest multiple of 128 that divides `total` (itself a multiple of 128)
    and is <= target; falls back to 128.  Exact division keeps every weight
    chunk fully in-bounds (no reliance on unspecified OOB reads on a
    contraction axis)."""
    n = total // _LANE
    best = 1
    for d in range(1, n + 1):
        if n % d == 0 and d * _LANE <= target:
            best = d
    return best * _LANE


def _vmem_limit(buffer_bytes, headroom=8 << 20, cap=64 << 20):
    # Cap at 64 MiB so the request is valid on v7x as well as v5e/v6e.
    return int(min(max(buffer_bytes + headroom, 16 << 20), cap))


def _sigmoid(z):
    # sigmoid(z) == 0.5 * tanh(z / 2) + 0.5 ; tanh runs on the EUP slot.
    return 0.5 * jnp.tanh(0.5 * z) + 0.5


def _spec(shape, index_map, buffers=None):
    if buffers is None:
        return pl.BlockSpec(shape, index_map)
    return pl.BlockSpec(shape, index_map, pipeline_mode=pl.Buffered(buffers))


class SAEParams(NamedTuple):
    """Feature-padded (lane-dense) parameters, prepared once and reused."""
    w_enc: jax.Array   # (dx_p, dh_p)  compute dtype
    b_enc: jax.Array   # (1, dh_p)     float32
    w_dec: jax.Array   # (dh_p, do_p)  compute dtype
    b_dec: jax.Array   # (1, do_p)     float32


def prepare_params(w_enc, b_enc, w_dec, b_dec, compute_dtype=jnp.bfloat16):
    """Pad every feature dim up to a multiple of 128 (with zeros) and cast the
    weight matrices to the MXU compute dtype.  Call once; reuse across calls.
    Padded rows of W_dec are zero, which is what makes the padded H lanes
    (sigmoid(0)=0.5) contribute nothing to real output columns."""
    dim_X, dim_H = w_enc.shape
    dim_out = w_dec.shape[1]
    dx_p = _round_up(dim_X, _LANE)
    dh_p = _round_up(dim_H, _LANE)
    do_p = _round_up(dim_out, _LANE)

    b_enc = jnp.asarray(b_enc, jnp.float32).reshape(1, dim_H)
    b_dec = jnp.asarray(b_dec, jnp.float32).reshape(1, dim_out)

    w_enc_p = jnp.zeros((dx_p, dh_p), compute_dtype).at[:dim_X, :dim_H].set(
        w_enc.astype(compute_dtype))
    b_enc_p = jnp.zeros((1, dh_p), jnp.float32).at[:, :dim_H].set(b_enc)
    w_dec_p = jnp.zeros((dh_p, do_p), compute_dtype).at[:dim_H, :dim_out].set(
        w_dec.astype(compute_dtype))
    b_dec_p = jnp.zeros((1, do_p), jnp.float32).at[:, :dim_out].set(b_dec)
    return SAEParams(w_enc_p, b_enc_p, w_dec_p, b_dec_p), (dim_X, dim_H, dim_out)


# --------------------------------------------------------------------------
# Kernels
# --------------------------------------------------------------------------


def _encoder_kernel(x_ref, w_enc_ref, b_enc_ref, h_ref):
    # One (TB, TH) tile of H = sigmoid(X @ W_enc + b_enc).
    h_lin = jnp.dot(x_ref[...], w_enc_ref[...], preferred_element_type=jnp.float32)
    h_ref[...] = _sigmoid(h_lin + b_enc_ref[...]).astype(h_ref.dtype)


def _fused_kernel(x_ref, w_enc_ref, b_enc_ref, w_dec_ref, b_dec_ref, out_ref):
    # Small/medium dim_H: both weights resident; H never leaves vregs/VMEM.
    h_lin = jnp.dot(x_ref[...], w_enc_ref[...], preferred_element_type=jnp.float32)
    h = _sigmoid(h_lin + b_enc_ref[...]).astype(w_dec_ref.dtype)
    o_lin = jnp.dot(h, w_dec_ref[...], preferred_element_type=jnp.float32)
    out_ref[...] = _sigmoid(o_lin + b_dec_ref[...]).astype(out_ref.dtype)


def _chunked_kernel(x_ref, w_enc_ref, b_enc_ref, w_dec_ref, b_dec_ref, out_ref,
                    acc_ref):
    # Large dim_H: stream TK-wide chunks of the hidden dim; only a (TB, TK)
    # slice of H is ever live and neither weight matrix is fully resident.
    k = pl.program_id(1)

    @pl.when(k == 0)
    def _():
        acc_ref[...] = jnp.zeros_like(acc_ref)

    h_lin = jnp.dot(x_ref[...], w_enc_ref[...], preferred_element_type=jnp.float32)
    h = _sigmoid(h_lin + b_enc_ref[...]).astype(w_dec_ref.dtype)
    acc_ref[...] += jnp.dot(h, w_dec_ref[...], preferred_element_type=jnp.float32)

    @pl.when(k == pl.num_programs(1) - 1)
    def _():
        out_ref[...] = _sigmoid(acc_ref[...] + b_dec_ref[...]).astype(out_ref.dtype)


# --------------------------------------------------------------------------
# Wrapper
# --------------------------------------------------------------------------


@functools.partial(
    jax.jit,
    static_argnames=("dims", "rep", "batch_tile", "hidden_tile", "force_chunked"),
)
def autoencoder_forward(x, params, dims, rep=False, batch_tile=256,
                        hidden_tile=2048, force_chunked=False):
    """SS-SAE forward pass.

    x: (B, dim_X); params: SAEParams from prepare_params (feature-padded);
    dims: (dim_X, dim_H, dim_out) original sizes (static).
    rep=True returns the hidden code H; rep=False the reconstruction.
    """
    dim_X, dim_H, dim_out = dims
    B = x.shape[0]
    assert x.shape[1] == dim_X
    w_enc_p, b_enc_p, w_dec_p, b_dec_p = params
    dx_p, dh_p = w_enc_p.shape
    do_p = w_dec_p.shape[1]
    compute_dtype = w_enc_p.dtype
    out_dtype = x.dtype
    cs = jnp.dtype(compute_dtype).itemsize
    osz = jnp.dtype(out_dtype).itemsize

    # Cast to the MXU dtype; lane-pad the feature dim only if needed.
    x_c = x.astype(compute_dtype)
    if dx_p != dim_X:
        x_c = jnp.pad(x_c, ((0, 0), (0, dx_p - dim_X)))

    # Batch tile: multiple of 16 (sublane packing for bf16), never larger than
    # the (rounded) batch, and capped at ~half the batch (>=128) so that large
    # batches leave >=2 tiles on the "parallel" axis (v7x megacore).
    tb_full = _round_up(B, 16)
    tb_half = _round_up(max(B // 2, 1), 16)
    TB = max(16, min(batch_tile, tb_full, max(128, tb_half)))
    n_b = pl.cdiv(B, TB)   # partial last block: padded reads, masked writes

    # ---------------------------- encoder only -----------------------------
    if rep:
        TH = _pick_chunk(dh_p, max(_LANE, hidden_tile))
        n_h = dh_p // TH
        wb = 1 if n_h == 1 else None   # single-buffer weights only if resident

        vmem_bytes = (
            2 * TB * dx_p * cs
            + (1 if wb else 2) * (dx_p * TH * cs + TH * 4)
            + 2 * TB * TH * osz
            + 2 * TB * TH * 4)          # f32 logits / epilogue temps
        cp = pltpu.CompilerParams(
            dimension_semantics=("parallel", "parallel"),
            vmem_limit_bytes=_vmem_limit(vmem_bytes))
        cost = pl.CostEstimate(
            flops=2 * B * dx_p * dh_p,
            transcendentals=B * dh_p,
            bytes_accessed=cs * (B * dx_p + dx_p * dh_p) + 4 * dh_p
            + osz * B * dh_p)

        h_p = pl.pallas_call(
            _encoder_kernel,
            out_shape=jax.ShapeDtypeStruct((B, dh_p), out_dtype),
            grid=(n_b, n_h),
            in_specs=[
                _spec((TB, dx_p), lambda i, j: (i, 0)),
                _spec((dx_p, TH), lambda i, j: (0, j), wb),
                _spec((1, TH), lambda i, j: (0, j), wb),
            ],
            out_specs=_spec((TB, TH), lambda i, j: (i, j)),
            compiler_params=cp,
            cost_estimate=cost,
        )(x_c, w_enc_p, b_enc_p)
        return h_p if dh_p == dim_H else h_p[:, :dim_H]

    # --------------------------- full autoencoder ---------------------------
    fused_bytes = (
        2 * TB * dx_p * cs                       # x (double-buffered)
        + dx_p * dh_p * cs + dh_p * 4            # resident w_enc + b_enc (1 buf)
        + dh_p * do_p * cs + do_p * 4            # resident w_dec + b_dec (1 buf)
        + 2 * TB * do_p * osz                    # out (double-buffered)
        + 2 * TB * dh_p * 4                      # live f32 H between the matmuls
        + 2 * TB * do_p * 4)                     # f32 decoder logits / epilogue
    use_chunked = force_chunked or fused_bytes > (40 << 20)

    if not use_chunked:
        cp = pltpu.CompilerParams(
            dimension_semantics=("parallel",),
            vmem_limit_bytes=_vmem_limit(fused_bytes))
        cost = pl.CostEstimate(
            flops=2 * B * (dx_p * dh_p + dh_p * do_p),
            transcendentals=B * (dh_p + do_p),
            bytes_accessed=cs * (B * dx_p + dx_p * dh_p + dh_p * do_p)
            + 4 * (dh_p + do_p) + osz * B * do_p)
        out_p = pl.pallas_call(
            _fused_kernel,
            out_shape=jax.ShapeDtypeStruct((B, do_p), out_dtype),
            grid=(n_b,),
            in_specs=[
                _spec((TB, dx_p), lambda i: (i, 0)),
                _spec((dx_p, dh_p), lambda i: (0, 0), 1),
                _spec((1, dh_p), lambda i: (0, 0), 1),
                _spec((dh_p, do_p), lambda i: (0, 0), 1),
                _spec((1, do_p), lambda i: (0, 0), 1),
            ],
            out_specs=_spec((TB, do_p), lambda i: (i, 0)),
            compiler_params=cp,
            cost_estimate=cost,
        )(x_c, w_enc_p, b_enc_p, w_dec_p, b_dec_p)
    else:
        TK = _pick_chunk(dh_p, max(_LANE, hidden_tile))
        n_k = dh_p // TK
        chunk_bytes = (
            2 * TB * dx_p * cs
            + 2 * (dx_p * TK * cs + TK * 4)      # streamed w_enc / b_enc chunks
            + 2 * TK * do_p * cs + do_p * 4      # streamed w_dec chunks + b_dec
            + 2 * TB * do_p * osz
            + TB * do_p * 4                      # f32 accumulator scratch
            + 2 * TB * TK * 4)                   # live f32 H chunk
        cp = pltpu.CompilerParams(
            dimension_semantics=("parallel", "arbitrary"),
            vmem_limit_bytes=_vmem_limit(chunk_bytes))
        cost = pl.CostEstimate(
            flops=2 * B * (dx_p * dh_p + dh_p * do_p),
            transcendentals=B * (dh_p + do_p),
            bytes_accessed=cs * (n_b * dx_p * dh_p + n_b * dh_p * do_p + B * dx_p)
            + 4 * (dh_p + do_p) + osz * B * do_p)
        out_p = pl.pallas_call(
            _chunked_kernel,
            out_shape=jax.ShapeDtypeStruct((B, do_p), out_dtype),
            grid=(n_b, n_k),
            in_specs=[
                _spec((TB, dx_p), lambda i, k: (i, 0)),
                _spec((dx_p, TK), lambda i, k: (0, k)),
                _spec((1, TK), lambda i, k: (0, k)),
                _spec((TK, do_p), lambda i, k: (k, 0)),
                _spec((1, do_p), lambda i, k: (0, 0), 1),
            ],
            out_specs=_spec((TB, do_p), lambda i, k: (i, 0)),
            scratch_shapes=[pltpu.VMEM((TB, do_p), jnp.float32)],
            compiler_params=cp,
            cost_estimate=cost,
        )(x_c, w_enc_p, b_enc_p, w_dec_p, b_dec_p)

    return out_p if do_p == dim_out else out_p[:, :dim_out]


# --------------------------------------------------------------------------
# Reference & test
# --------------------------------------------------------------------------


def _reference_forward(x, w_enc, b_enc, w_dec, b_dec, rep=False):
    hp = jax.lax.Precision.HIGHEST
    h = jax.nn.sigmoid(jnp.dot(x, w_enc, precision=hp) + b_enc.reshape(1, -1))
    if rep:
        return h
    return jax.nn.sigmoid(jnp.dot(h, w_dec, precision=hp) + b_dec.reshape(1, -1))


if __name__ == "__main__":
    def _check(name, got, want, atol):
        assert got.shape == want.shape, (name, got.shape, want.shape)
        err = float(jnp.max(jnp.abs(got.astype(jnp.float32) - want)))
        assert err <= atol, (name, err, atol)

    # ---- Case 1: tiny shapes consistent with the module --------------------
    B, dim_X, dim_H = 8, 16, 32
    kx, kwe, kbe, kwd, kbd = jax.random.split(jax.random.PRNGKey(0), 5)
    lim_e, lim_d = 1.0 / dim_X ** 0.5, 1.0 / dim_H ** 0.5
    x = jax.random.normal(kx, (B, dim_X), jnp.float32)
    w_enc = jax.random.uniform(kwe, (dim_X, dim_H), jnp.float32, -lim_e, lim_e)
    b_enc = jax.random.uniform(kbe, (dim_H,), jnp.float32, -lim_e, lim_e)
    w_dec = jax.random.uniform(kwd, (dim_H, dim_X + 1), jnp.float32, -lim_d, lim_d)
    b_dec = jax.random.uniform(kbd, (dim_X + 1,), jnp.float32, -lim_d, lim_d)

    ref_out = _reference_forward(x, w_enc, b_enc, w_dec, b_dec, rep=False)
    ref_h = _reference_forward(x, w_enc, b_enc, w_dec, b_dec, rep=True)

    # f32 compute path (tight-ish tolerance: validates the kernel logic).
    params32, dims = prepare_params(w_enc, b_enc, w_dec, b_dec, jnp.float32)
    out32 = autoencoder_forward(x, params32, dims=dims, rep=False)
    h32 = autoencoder_forward(x, params32, dims=dims, rep=True)
    out32c = autoencoder_forward(x, params32, dims=dims, rep=False,
                                 force_chunked=True, hidden_tile=128)
    jax.block_until_ready((out32, h32, out32c))
    _check("out_f32", out32, ref_out, 2e-3)
    _check("h_f32", h32, ref_h, 2e-3)
    _check("out_f32_chunked", out32c, ref_out, 2e-3)

    # bf16 MXU compute path (production default; looser tolerance).
    params16, dims = prepare_params(w_enc, b_enc, w_dec, b_dec, jnp.bfloat16)
    out16 = autoencoder_forward(x, params16, dims=dims, rep=False)
    h16 = autoencoder_forward(x, params16, dims=dims, rep=True)
    jax.block_until_ready((out16, h16))
    _check("out_bf16", out16, ref_out, 2e-2)
    _check("h_bf16", h16, ref_h, 2e-2)

    # ---- Case 2: unaligned batch/features, multi-step batch & hidden chunks -
    B2, dX2, dH2 = 200, 20, 300
    k2 = jax.random.split(jax.random.PRNGKey(1), 5)
    le2, ld2 = 1.0 / dX2 ** 0.5, 1.0 / dH2 ** 0.5
    x2 = jax.random.normal(k2[0], (B2, dX2), jnp.float32)
    we2 = jax.random.uniform(k2[1], (dX2, dH2), jnp.float32, -le2, le2)
    be2 = jax.random.uniform(k2[2], (dH2,), jnp.float32, -le2, le2)
    wd2 = jax.random.uniform(k2[3], (dH2, dX2 + 1), jnp.float32, -ld2, ld2)
    bd2 = jax.random.uniform(k2[4], (dX2 + 1,), jnp.float32, -ld2, ld2)

    ref_out2 = _reference_forward(x2, we2, be2, wd2, bd2, rep=False)
    ref_h2 = _reference_forward(x2, we2, be2, wd2, bd2, rep=True)

    p2, dims2 = prepare_params(we2, be2, wd2, bd2, jnp.float32)
    o2 = autoencoder_forward(x2, p2, dims=dims2, rep=False)
    o2c = autoencoder_forward(x2, p2, dims=dims2, rep=False,
                              force_chunked=True, hidden_tile=128)
    h2 = autoencoder_forward(x2, p2, dims=dims2, rep=True, hidden_tile=128)
    jax.block_until_ready((o2, o2c, h2))
    _check("out2_f32", o2, ref_out2, 2e-3)
    _check("out2_f32_chunked", o2c, ref_out2, 2e-3)
    _check("h2_f32", h2, ref_h2, 2e-3)

    print("KERNEL_OK")
</pallas_src>

<mosaic_0001>
module attributes {stable_mosaic.version = 11 : i64} {
  func.func @_fused_kernel(%arg0: i32, %arg1: memref<16x128xf32, #tpu.memory_space<vmem>>, %arg2: memref<128x128xf32, #tpu.memory_space<vmem>>, %arg3: memref<1x128xf32, #tpu.memory_space<vmem>>, %arg4: memref<128x128xf32, #tpu.memory_space<vmem>>, %arg5: memref<1x128xf32, #tpu.memory_space<vmem>>, %arg6: memref<16x128xf32, #tpu.memory_space<vmem>>) attributes {dimension_semantics = [#tpu.dimension_semantics<parallel>], iteration_bounds = array<i64: 1>, scalar_prefetch = 0 : i64, scratch_operands = 0 : i64, tpu.core_type = #tpu.core_type<tc>, window_params = [{transform_indices = @transform_0, window_bounds = array<i64: 16, 128>}, {pipeline_mode = #tpu.pipeline_mode<synchronous>, transform_indices = @transform_1, window_bounds = array<i64: 128, 128>}, {pipeline_mode = #tpu.pipeline_mode<synchronous>, transform_indices = @transform_2, window_bounds = array<i64: 1, 128>}, {pipeline_mode = #tpu.pipeline_mode<synchronous>, transform_indices = @transform_3, window_bounds = array<i64: 128, 128>}, {pipeline_mode = #tpu.pipeline_mode<synchronous>, transform_indices = @transform_4, window_bounds = array<i64: 1, 128>}, {transform_indices = @transform_5, window_bounds = array<i64: 16, 128>}]} {
    %c0 = arith.constant 0 : index
    %c0_0 = arith.constant 0 : index
    %0 = vector.load %arg1[%c0, %c0_0] : memref<16x128xf32, #tpu.memory_space<vmem>>, vector<16x128xf32>
    %c0_1 = arith.constant 0 : index
    %c0_2 = arith.constant 0 : index
    %1 = vector.load %arg2[%c0_1, %c0_2] : memref<128x128xf32, #tpu.memory_space<vmem>>, vector<128x128xf32>
    %cst = arith.constant dense<0.000000e+00> : vector<16x128xf32>
    %2 = tpu.matmul %0, %1, %cst {dimension_numbers = #tpu.dot_dimension_numbers<[1], [0], [0], [1], [0, 0, 1, 1], [], []>} : vector<16x128xf32>, vector<128x128xf32>, vector<16x128xf32> -> vector<16x128xf32>
    %c0_3 = arith.constant 0 : index
    %c0_4 = arith.constant 0 : index
    %3 = vector.load %arg3[%c0_3, %c0_4] : memref<1x128xf32, #tpu.memory_space<vmem>>, vector<1x128xf32>
    %4 = vector.broadcast %3 : vector<1x128xf32> to vector<16x128xf32>
    %5 = arith.addf %2, %4 : vector<16x128xf32>
    %cst_5 = arith.constant 5.000000e-01 : f32
    %6 = vector.broadcast %cst_5 : f32 to vector<16x128xf32>
    %7 = arith.mulf %6, %5 : vector<16x128xf32>
    %8 = math.tanh %7 : vector<16x128xf32>
    %cst_6 = arith.constant 5.000000e-01 : f32
    %9 = vector.broadcast %cst_6 : f32 to vector<16x128xf32>
    %10 = arith.mulf %9, %8 : vector<16x128xf32>
    %cst_7 = arith.constant 5.000000e-01 : f32
    %11 = vector.broadcast %cst_7 : f32 to vector<16x128xf32>
    %12 = arith.addf %10, %11 : vector<16x128xf32>
    %c0_8 = arith.constant 0 : index
    %c0_9 = arith.constant 0 : index
    %13 = vector.load %arg4[%c0_8, %c0_9] : memref<128x128xf32, #tpu.memory_space<vmem>>, vector<128x128xf32>
    %cst_10 = arith.constant dense<0.000000e+00> : vector<16x128xf32>
    %14 = tpu.matmul %12, %13, %cst_10 {dimension_numbers = #tpu.dot_dimension_numbers<[1], [0], [0], [1], [0, 0, 1, 1], [], []>} : vector<16x128xf32>, vector<128x128xf32>, vector<16x128xf32> -> vector<16x128xf32>
    %c0_11 = arith.constant 0 : index
    %c0_12 = arith.constant 0 : index
    %15 = vector.load %arg5[%c0_11, %c0_12] : memref<1x128xf32, #tpu.memory_space<vmem>>, vector<1x128xf32>
    %16 = vector.broadcast %15 : vector<1x128xf32> to vector<16x128xf32>
    %17 = arith.addf %14, %16 : vector<16x128xf32>
    %cst_13 = arith.constant 5.000000e-01 : f32
    %18 = vector.broadcast %cst_13 : f32 to vector<16x128xf32>
    %19 = arith.mulf %18, %17 : vector<16x128xf32>
    %20 = math.tanh %19 : vector<16x128xf32>
    %cst_14 = arith.constant 5.000000e-01 : f32
    %21 = vector.broadcast %cst_14 : f32 to vector<16x128xf32>
    %22 = arith.mulf %21, %20 : vector<16x128xf32>
    %cst_15 = arith.constant 5.000000e-01 : f32
    %23 = vector.broadcast %cst_15 : f32 to vector<16x128xf32>
    %24 = arith.addf %22, %23 : vector<16x128xf32>
    %c0_16 = arith.constant 0 : index
    %c0_17 = arith.constant 0 : index
    %25 = vector.load %arg6[%c0_16, %c0_17] : memref<16x128xf32, #tpu.memory_space<vmem>>, vector<16x128xf32>
    tpu.vector_store %arg6[%c0_16, %c0_17], %24 {strides = array<i32>} : memref<16x128xf32, #tpu.memory_space<vmem>>, vector<16x128xf32>,
    return
  }
  func.func @transform_0(%arg0: i32) -> (i32, i32) {
    %c0_i32 = arith.constant 0 : i32
    %c0_i32_0 = arith.constant 0 : i32
    return %arg0, %c0_i32 : i32, i32
  }
  func.func @transform_1(%arg0: i32) -> (i32, i32) {
    %c0_i32 = arith.constant 0 : i32
    %c0_i32_0 = arith.constant 0 : i32
    %c0_i32_1 = arith.constant 0 : i32
    return %c0_i32, %c0_i32_0 : i32, i32
  }
  func.func @transform_2(%arg0: i32) -> (i32, i32) {
    %c0_i32 = arith.constant 0 : i32
    %c0_i32_0 = arith.constant 0 : i32
    %c0_i32_1 = arith.constant 0 : i32
    return %c0_i32, %c0_i32_0 : i32, i32
  }
  func.func @transform_3(%arg0: i32) -> (i32, i32) {
    %c0_i32 = arith.constant 0 : i32
    %c0_i32_0 = arith.constant 0 : i32
    %c0_i32_1 = arith.constant 0 : i32
    return %c0_i32, %c0_i32_0 : i32, i32
  }
  func.func @transform_4(%arg0: i32) -> (i32, i32) {
    %c0_i32 = arith.constant 0 : i32
    %c0_i32_0 = arith.constant 0 : i32
    %c0_i32_1 = arith.constant 0 : i32
    return %c0_i32, %c0_i32_0 : i32, i32
  }
  func.func @transform_5(%arg0: i32) -> (i32, i32) {
    %c0_i32 = arith.constant 0 : i32
    %c0_i32_0 = arith.constant 0 : i32
    return %arg0, %c0_i32 : i32, i32
  }
}

</mosaic_0001>

<bundles_post_ra>
// kernel: autoencoder_forward.1
= control target key start
LH: loop header
LB: loop body
LE: loop exit
PB: predicated region body
PF: predicated region fallthrough
CT: control target
= control target key end

     0   :  { %10 = vsyncpa [#allocation3], 0  ;;  %s632_s0 = inlined_call_operand.vmem [shape: f32[8,128], index: 0, kind: input, shape index: {}]   ;;  %s633_s1 = inlined_call_operand.hbm [shape: f32[128,128], index: 1, kind: input, shape index: {}]   ;;  %s634_s2 = inlined_call_operand.vmem [shape: f32[1,128], index: 2, kind: input, shape index: {}]   ;;  %s635_s3 = inlined_call_operand.hbm [shape: f32[128,128], index: 3, kind: input, shape index: {}]   ;;  %s636_s4 = inlined_call_operand.vmem [shape: f32[1,128], index: 4, kind: input, shape index: {}]   ;;  %s637_s5 = inlined_call_operand.hbm [shape: f32[8,128], index: 5, kind: output, shape index: {}]  }
   0x1   :  { %11 = vsyncpa [#allocation6], 0 }
   0x2   :  { %12 = vsyncpa [#allocation4], 0  ;;  %s540_s18 = smov [#allocation2]   ;;  %s468_s22 = scalar_lea.hbm %s633_s1, 2048 }
   0x3   :  { %s20_s19 = sshll.u32 %s540_s18, 4  ;;  %p469_p0 = scmp.ne.s32.totalorder %s633_s1, %s468_s22  ;;  %s21_s19 = int_to_ptr.vmem [resolvable:$true] %s20_s19 }
   0x4   :  { %p472_p1 = scmp.lt.u32.totalorder %s468_s22, %s633_s1 }
   0x6   :  { %p474_p2 = pnand %p472_p1, %p469_p0 }
   0x8   :  { %477 = shalt.err (!%p474_p2)
}
   0x9   :  { %s478_s27 = scalar_lea.vmem %s21_s19, 2048  ;;  %p483_p4 = scmp.lt.s32.totalorder %s21_s19, %s21_s19 }
   0xa   :  { %p479_p3 = scmp.ne.s32.totalorder %s21_s19, %s478_s27  ;;  %p484_p5 = scmp.lt.s32.totalorder %s478_s27, %s478_s27 }
   0xc   :  { %p485_p6 = por %p484_p5, %p483_p4 }
   0xe   :  { %p486_p7 = pnand %p485_p6, %p479_p3 }
  0x10   :  { %489 = shalt.err (!%p486_p7)
}
  0x11   :  { %s541_s28 = smov 128   ;;  %s542_s29 = smov 8  }
  0x12   :  { %26 = dma.hbm_to_vmem [thread:$0]  %s633_s1, 2048, %s21_s19, [#allocation3], %s541_s28, %s541_s28, %s542_s29  }
  0x13   :  { %s543_s7 = smov [#allocation5]   ;;  %s490_s11 = scalar_lea.hbm %s635_s3, 2048 }
  0x14   :  { %s34_s8 = sshll.u32 %s543_s7, 4  ;;  %p491_p8 = scmp.ne.s32.totalorder %s635_s3, %s490_s11  ;;  %s35_s8 = int_to_ptr.vmem [resolvable:$true] %s34_s8 }
  0x15   :  { %p494_p9 = scmp.lt.u32.totalorder %s490_s11, %s635_s3 }
  0x17   :  { %p496_p10 = pnand %p494_p9, %p491_p8 }
  0x19   :  { %499 = shalt.err (!%p496_p10)
}
  0x1a   :  { %s500_s16 = scalar_lea.vmem %s35_s8, 2048  ;;  %p505_p12 = scmp.lt.s32.totalorder %s35_s8, %s35_s8 }
  0x1b   :  { %p501_p11 = scmp.ne.s32.totalorder %s35_s8, %s500_s16  ;;  %p506_p13 = scmp.lt.s32.totalorder %s500_s16, %s500_s16 }
  0x1d   :  { %p507_p0 = por %p506_p13, %p505_p12 }
  0x1f   :  { %p508_p1 = pnand %p507_p0, %p501_p11 }
  0x21   :  { %511 = shalt.err (!%p508_p1)
}
  0x22   :  { %40 = dma.hbm_to_vmem [thread:$0]  %s635_s3, 2048, %s35_s8, [#allocation6], %s541_s28, %s541_s28, %s542_s29  }
  0x23   :  { %534 = dma.done.wait [#allocation3], 2048  }
  0x24   :  { %535 = vsyncadd [#allocation3], 4294965248 }
  0x25   :  { %536 = dma.done.wait [#allocation6], 2048  }
  0x26   :  { %537 = vsyncadd [#allocation6], 4294965248  ;;  %v51_v0 = vld [vmem:[#allocation2] sm:$0xff]  ;;  %v52_v1 = vld [vmem:[#allocation2 + $0x8] sm:$0xff] }
  0x27   :  { %v53_v2 = vld [vmem:[#allocation2 + $0x10] sm:$0xff]  ;;  %v391_v3 = vpack.c.bf16 %v52_v1, %v51_v0  ;;  %v54_v4 = vld [vmem:[#allocation2 + $0x18] sm:$0xff]  ;;  %v55_v6 = vld [vmem:[#allocation2 + $0x20] sm:$0xff] }
  0x28   :  { %v395_v5 = vpack.c.bf16 %v54_v4, %v53_v2  ;;  %v56_v7 = vld [vmem:[#allocation2 + $0x28] sm:$0xff]  ;;  %v57_v9 = vld [vmem:[#allocation2 + $0x30] sm:$0xff]  ;;  %v58_v10 = vld [vmem:[#allocation2 + $0x38] sm:$0xff] }
  0x29   :  { %392 = vmatprep.subr.bf16.mxu0 %v391_v3  ;;  %v399_v8 = vpack.c.bf16 %v56_v7, %v55_v6  ;;  %v49_v11 = vld [vmem:[%s632_s0] sm:$0xff]  ;;  %v157_v12 = vld [vmem:[#allocation5] sm:$0xff]  ;;  %v158_v13 = vld [vmem:[#allocation5 + $0x8] sm:$0xff]  ;;  %v403_v20 = vpack.c.bf16 %v58_v10, %v57_v9 }
  0x2a   :  { %394 = vmatpush3.bf16.msra.mxu0 %v391_v3  ;;  %353 = vmatprep.mubr.f32.mxu0 %v49_v11  ;;  %v159_v14 = vld [vmem:[#allocation5 + $0x10] sm:$0xff]  ;;  %v423_v15 = vpack.c.bf16 %v158_v13, %v157_v12  ;;  %v160_v16 = vld [vmem:[#allocation5 + $0x18] sm:$0xff]  ;;  %v161_v18 = vld [vmem:[#allocation5 + $0x20] sm:$0xff] }
  0x2b   :  { %396 = vmatprep.subr.bf16.mxu0 %v395_v5  ;;  %v427_v17 = vpack.c.bf16 %v160_v16, %v159_v14  ;;  %v162_v19 = vld [vmem:[#allocation5 + $0x28] sm:$0xff]  ;;  %v59_v21 = vld [vmem:[#allocation2 + $0x40] sm:$0xff]  ;;  %v61_v25 = vld [vmem:[#allocation2 + $0x50] sm:$0xff] }
  0x2c   :  { %424 = vmatprep.subr.bf16.mxu1 %v423_v15  ;;  %v60_v22 = vld [vmem:[#allocation2 + $0x48] sm:$0xff]  ;;  %v431_v23 = vpack.c.bf16 %v162_v19, %v161_v18  ;;  %v62_v26 = vld [vmem:[#allocation2 + $0x58] sm:$0xff]  ;;  %v63_v28 = vld [vmem:[#allocation2 + $0x60] sm:$0xff] }
  0x2d   :  { %426 = vmatpush3.bf16.msra.mxu1 %v423_v15  ;;  %v407_v24 = vpack.c.bf16 %v60_v22, %v59_v21  ;;  %v411_v27 = vpack.c.bf16 %v62_v26, %v61_v25  ;;  %v64_v29 = vld [vmem:[#allocation2 + $0x68] sm:$0xff]  ;;  %v65_v31 = vld [vmem:[#allocation2 + $0x70] sm:$0xff]  ;;  %v66_v32 = vld [vmem:[#allocation2 + $0x78] sm:$0xff] }
  0x2e   :  { %398 = vmatpush3.bf16.msra.mxu0 %v395_v5  ;;  %428 = vmatprep.subr.bf16.mxu1 %v427_v17  ;;  %v415_v30 = vpack.c.bf16 %v64_v29, %v63_v28  ;;  %v419_v33 = vpack.c.bf16 %v66_v32, %v65_v31  ;;  %v50_v34 = vld [vmem:[%s632_s0 + $0x8] sm:$0xff]  ;;  %v163_v35 = vld [vmem:[#allocation5 + $0x30] sm:$0xff]  ;;  %v164_v36 = vld [vmem:[#allocation5 + $0x38] sm:$0xff] }
  0x2f   :  { %400 = vmatprep.subr.bf16.mxu0 %v399_v8  ;;  %v435_v37 = vpack.c.bf16 %v164_v36, %v163_v35  ;;  %v165_v38 = vld [vmem:[#allocation5 + $0x40] sm:$0xff]  ;;  %v166_v39 = vld [vmem:[#allocation5 + $0x48] sm:$0xff]  ;;  %v167_v41 = vld [vmem:[#allocation5 + $0x50] sm:$0xff] }
  0x30   :  { %v439_v40 = vpack.c.bf16 %v166_v39, %v165_v38  ;;  %v168_v42 = vld [vmem:[#allocation5 + $0x58] sm:$0xff]  ;;  %v169_v44 = vld [vmem:[#allocation5 + $0x60] sm:$0xff]  ;;  %v170_v45 = vld [vmem:[#allocation5 + $0x68] sm:$0xff] }
  0x31   :  { %430 = vmatpush3.bf16.msra.mxu1 %v427_v17  ;;  %v443_v43 = vpack.c.bf16 %v168_v42, %v167_v41  ;;  %v447_v46 = vpack.c.bf16 %v170_v45, %v169_v44  ;;  %v171_v47 = vld [vmem:[#allocation5 + $0x70] sm:$0xff]  ;;  %v172_v48 = vld [vmem:[#allocation5 + $0x78] sm:$0xff] }
  0x32   :  { %402 = vmatpush3.bf16.msra.mxu0 %v399_v8  ;;  %432 = vmatprep.subr.bf16.mxu1 %v431_v23  ;;  %v451_v49 = vpack.c.bf16 %v172_v48, %v171_v47  ;;  %v283_v50 = vld [vmem:[%s634_s2] ss:$0 sm:$0xff] }
  0x33   :  { %404 = vmatprep.subr.bf16.mxu0 %v403_v20  ;;  %v284_v63 = vld [vmem:[%s636_s4] ss:$0 sm:$0xff] }
  0x35   :  { %434 = vmatpush3.bf16.msra.mxu1 %v431_v23 }
  0x36   :  { %406 = vmatpush3.bf16.msra.mxu0 %v403_v20  ;;  %436 = vmatprep.subr.bf16.mxu1 %v435_v37 }
  0x37   :  { %408 = vmatprep.subr.bf16.mxu0 %v407_v24 }
  0x39   :  { %438 = vmatpush3.bf16.msra.mxu1 %v435_v37 }
  0x3a   :  { %410 = vmatpush3.bf16.msra.mxu0 %v407_v24  ;;  %440 = vmatprep.subr.bf16.mxu1 %v439_v40 }
  0x3b   :  { %412 = vmatprep.subr.bf16.mxu0 %v411_v27 }
  0x3d   :  { %442 = vmatpush3.bf16.msra.mxu1 %v439_v40 }
  0x3e   :  { %414 = vmatpush3.bf16.msra.mxu0 %v411_v27  ;;  %444 = vmatprep.subr.bf16.mxu1 %v443_v43 }
  0x3f   :  { %416 = vmatprep.subr.bf16.mxu0 %v415_v30 }
  0x41   :  { %446 = vmatpush3.bf16.msra.mxu1 %v443_v43 }
  0x42   :  { %418 = vmatpush3.bf16.msra.mxu0 %v415_v30  ;;  %448 = vmatprep.subr.bf16.mxu1 %v447_v46 }
  0x43   :  { %420 = vmatprep.subr.bf16.mxu0 %v419_v33 }
  0x45   :  { %450 = vmatpush3.bf16.msra.mxu1 %v447_v46 }
  0x46   :  { %422 = vmatpush3.bf16.msra.mxu0 %v419_v33  ;;  %452 = vmatprep.subr.bf16.mxu1 %v451_v49 }
  0x49   :  { %354 = vmatmul.mubr.f32.vlgmr.msra.gmra.mrb[0].mxu0 %v50_v34  ;;  %454 = vmatpush3.bf16.msra.mxu1 %v451_v49 }
 0x11c   :  { %v355_v51 = vpop.f32.mrb[0].mxu0 }
 0x11d   :  { %v146_v52 = vadd.f32 %v355_v51, %v283_v50  ;;  %v140_v53 = vpop.f32.mrb[1].mxu0 }
 0x11e   :  { %v141_v54 = vadd.f32 %v283_v50, %v140_v53 }
 0x11f   :  { %v150_v55 = vmul.f32 0.5, %v146_v52 }
 0x120   :  { %v149_v56 = vmul.f32 0.5, %v141_v54 }
 0x121   :  { %460 = vtanh.f32 %v150_v55 }
 0x122   :  { %462 = vtanh.f32 %v149_v56 }
 0x12b   :  { %v461_v57 = vpop.eup %460 }
 0x12c   :  { %v463_v58 = vpop.eup %462  ;;  %v154_v59 = vmul.f32 0.5, %v461_v57 }
 0x12d   :  { %v153_v60 = vmul.f32 0.5, %v463_v58 }
 0x12e   :  { %v156_v62 = vadd.f32 0.5, %v154_v59 }
 0x12f   :  { %v155_v61 = vadd.f32 0.5, %v153_v60 }
 0x131   :  { %388 = vmatprep.mubr.f32.mxu1 %v155_v61 }
 0x132   :  { %389 = vmatmul.mubr.f32.vlgmr.msra.gmra.mrb[0].mxu1 %v156_v62 }
 0x205   :  { %v390_v0 = vpop.f32.mrb[0].mxu1 }
 0x206   :  { %v252_v1 = vadd.f32 %v390_v0, %v284_v63  ;;  %v246_v2 = vpop.f32.mrb[1].mxu1 }
 0x207   :  { %v247_v3 = vadd.f32 %v284_v63, %v246_v2 }
 0x208   :  { %v256_v4 = vmul.f32 0.5, %v252_v1 }
 0x209   :  { %v255_v5 = vmul.f32 0.5, %v247_v3 }
 0x20a   :  { %464 = vtanh.f32 %v256_v4 }
 0x20b   :  { %466 = vtanh.f32 %v255_v5 }
 0x214   :  { %v465_v6 = vpop.eup %464 }
 0x215   :  { %v467_v7 = vpop.eup %466  ;;  %v260_v8 = vmul.f32 0.5, %v465_v6 }
 0x216   :  { %v259_v9 = vmul.f32 0.5, %v467_v7 }
 0x217   :  { %v262_v10 = vadd.f32 0.5, %v260_v8 }
 0x218   :  { %v261_v11 = vadd.f32 0.5, %v259_v9 }
 0x219   :  { %264 = vst [vmem:[#allocation7 + $0x8] sm:$0xff] %v262_v10 }
 0x21a   :  { %263 = vst [vmem:[#allocation7] sm:$0xff] %v261_v11 }
 0x21b   :  { %269 = vsyncadd [#allocation4], 128  ;;  %s544_s2 = smov [#allocation7]  }
 0x21c   :  { %s270_s24 = sshll.u32 %s544_s2, 4  ;;  %s271_s24 = int_to_ptr.vmem [resolvable:$true] %s270_s24 }
 0x21d   :  { %s512_s4 = scalar_lea.vmem %s271_s24, 128  ;;  %s516_s25 = scalar_lea.vmem %s271_s24, 256 }
 0x21e   :  { %p513_p2 = scmp.ne.s32.totalorder %s271_s24, %s512_s4  ;;  %p517_p3 = scmp.lt.s32.totalorder %s271_s24, %s271_s24 }
 0x21f   :  { %p518_p4 = scmp.lt.s32.totalorder %s516_s25, %s512_s4 }
 0x221   :  { %p519_p5 = por %p518_p4, %p517_p3 }
 0x223   :  { %p520_p6 = pnand %p519_p5, %p513_p2 }
 0x225   :  { %523 = shalt.err (!%p520_p6)
}
 0x226   :  { %s524_s30 = scalar_lea.hbm %s637_s5, 128 }
 0x227   :  { %p525_p7 = scmp.ne.s32.totalorder %s637_s5, %s524_s30  ;;  %p528_p8 = scmp.lt.u32.totalorder %s524_s30, %s637_s5 }
 0x229   :  { %p530_p9 = pnand %p528_p8, %p525_p7 }
 0x22b   :  { %533 = shalt.err (!%p530_p9)
}
 0x22c   :  { %276 = dma.vmem_to_hbm [thread:$0]  %s271_s24, 128, %s637_s5, [#allocation4], %s541_s28, %s541_s28, %s542_s29  }
 0x22d   :  { %538 = dma.done.wait [#allocation4], 256  }
 0x22e   :  { %539 = vsyncadd [#allocation4], 4294967040 }
 0x22f   :  { %280 = vsyncpa [#allocation3], 1 }
 0x230   :  { %281 = vsyncpa [#allocation6], 1 }
 0x231   :  { %282 = vsyncpa [#allocation4], 1 }

</bundles_post_ra>
